<compile_context>
chip_gen: v7x
topology: tpu7x:2x2x1
jax: 0.10.0
libtpu: 0.0.40
codegen_flags: <defaults>
</compile_context>

<pallas_src>
import math

import jax
import jax.numpy as jnp
from jax import lax
from jax.experimental import pallas as pl
from jax.experimental.pallas import tpu as pltpu

EPS = 1e-6
LANES = 128
_SUBLANE_MULT = {4: 8, 2: 16, 1: 32}  # f32 / bf16 / int8-fp8 sublane packing


def _make_l2_loss_kernel(n_valid, tile_rows, n_tiles):
    """Build the streaming sum-of-(|a-b|+eps)^2 kernel with statics baked in."""
    tile_elems = tile_rows * LANES
    need_mask = (n_tiles * tile_elems) != n_valid
    # Valid element count inside the last tile (<= tile_elems, fits int32).
    valid_in_last = n_valid - (n_tiles - 1) * tile_elems
    inv_n = 1.0 / float(n_valid)

    def kernel(fake_ref, inp_ref, out_ref, acc_ref):
        i = pl.program_id(0)

        @pl.when(i == 0)
        def _():
            acc_ref[...] = jnp.zeros_like(acc_ref)

        # Upcast inside the kernel (bf16 inputs halve HBM traffic on this
        # bandwidth-bound kernel; accumulation stays f32).
        f = fake_ref[...].astype(jnp.float32)
        x = inp_ref[...].astype(jnp.float32)
        d = jnp.abs(f - x) + EPS
        dd = d * d  # pure VPU work, fully hidden under DMA

        if need_mask:
            # Zero contributions at flat indices >= n_valid: rows of the last
            # block that are out of bounds plus the <128-element lane
            # remainder. jnp.where prevents OOB garbage (NaN/Inf) from
            # propagating into the sum.
            rows = lax.broadcasted_iota(jnp.int32, (tile_rows, LANES), 0)
            lanes = lax.broadcasted_iota(jnp.int32, (tile_rows, LANES), 1)
            flat_in_tile = rows * LANES + lanes
            thresh = jnp.where(i == n_tiles - 1, valid_in_last, tile_elems)
            dd = jnp.where(flat_in_tile < thresh, dd, 0.0)

        # Fold the tile into a single vreg-shaped accumulator: the axis-0 sum
        # over (8, 128) groups is plain VPU vreg adds (no XLU), and the tiny
        # scratch frees VMEM and the scarce vector-store slot.
        acc_ref[...] += jnp.sum(dd.reshape(tile_rows // 8, 8, LANES), axis=0)

        @pl.when(i == n_tiles - 1)
        def _():
            # Single cross-lane/sublane (XLU) reduction, done once.
            total = jnp.sum(acc_ref[...], keepdims=True)  # (1, 1)
            out_ref[...] = total * inv_n

    return kernel


def l2_loss_pallas(fake, inputv, *, max_tile_bytes=4 << 20,
                   small_input_bytes=256 * 1024):
    """Pallas equivalent of L2Loss.forward(fake, inputv) -> scalar f32."""
    assert fake.shape == inputv.shape, "inputs must have identical shapes"
    n_valid = int(math.prod(fake.shape))
    itemsize = jnp.dtype(fake.dtype).itemsize

    # Tiny inputs: a fused XLA reduce beats the pallas_call launch overhead
    # and stays fusable with surrounding ops.
    if n_valid * itemsize < small_input_bytes:
        diff = jnp.abs(fake.astype(jnp.float32) - inputv.astype(jnp.float32))
        return jnp.mean((diff + EPS) ** 2)

    sub = _SUBLANE_MULT.get(itemsize, 8)
    n_rows = -(-n_valid // LANES)

    # Largest tile that keeps 2 inputs x 2 pipeline buffers well inside scoped
    # VMEM on every generation (v7x has only 64 MiB physical VMEM).
    max_tile_rows = max(sub, (max_tile_bytes // (LANES * itemsize)) // sub * sub)
    if n_rows <= max_tile_rows:
        tile_rows = -(-n_rows // sub) * sub  # single block, rounded to sublanes
    else:
        tile_rows = max_tile_rows
    n_tiles = -(-n_rows // tile_rows)

    f_flat = fake.reshape(-1)
    x_flat = inputv.reshape(-1)
    lane_pad = n_rows * LANES - n_valid
    if lane_pad:
        # Rare case: flat size not a multiple of 128 -> pad by <128 elements so
        # the [rows, 128] slab reshape is legal. (Tile-level padding is handled
        # entirely by Pallas OOB blocks + the in-kernel mask -- no big pad copy.)
        f_flat = jnp.pad(f_flat, (0, lane_pad))
        x_flat = jnp.pad(x_flat, (0, lane_pad))
    f2d = f_flat.reshape(n_rows, LANES)
    x2d = x_flat.reshape(n_rows, LANES)

    kernel = _make_l2_loss_kernel(n_valid, tile_rows, n_tiles)

    tile_bytes = tile_rows * LANES * itemsize
    # 2 inputs x 2 pipeline buffers + headroom for output/acc/internal scratch.
    vmem_limit = int(max(2 * 2 * tile_bytes + (4 << 20), 16 << 20))

    # TODO(synk): on v7x, a leading size-2 "parallel" grid axis with two partial
    # (1,1) outputs summed in the wrapper would use both TensorCores for very
    # large HBM-resident inputs.
    out = pl.pallas_call(
        kernel,
        out_shape=jax.ShapeDtypeStruct((1, 1), jnp.float32),
        grid_spec=pltpu.PrefetchScalarGridSpec(
            num_scalar_prefetch=0,
            grid=(n_tiles,),
            in_specs=[
                pl.BlockSpec((tile_rows, LANES), lambda i: (i, 0)),
                pl.BlockSpec((tile_rows, LANES), lambda i: (i, 0)),
            ],
            out_specs=pl.BlockSpec((1, 1), lambda i: (0, 0)),
            scratch_shapes=[pltpu.VMEM((8, LANES), jnp.float32)],
        ),
        compiler_params=pltpu.CompilerParams(
            dimension_semantics=("arbitrary",),  # sequential reduction axis
            vmem_limit_bytes=vmem_limit,
        ),
    )(f2d, x2d)

    return out[0, 0]  # scalar, matching torch.mean


if __name__ == "__main__":
    key = jax.random.PRNGKey(0)
    k1, k2, k3, k4 = jax.random.split(key, 4)

    # Small NCHW-like inputs consistent with the module's forward signature.
    fake = jax.random.normal(k1, (2, 4, 16, 16), dtype=jnp.float32)
    inputv = jax.random.normal(k2, (2, 4, 16, 16), dtype=jnp.float32)

    # Force the Pallas kernel (the default wrapper routes tiny inputs through
    # the fused-XLA fallback).
    loss = l2_loss_pallas(fake, inputv, small_input_bytes=0)
    jax.block_until_ready(loss)
    ref = jnp.mean((jnp.abs(fake - inputv) + EPS) ** 2)
    assert jnp.allclose(loss, ref, rtol=1e-5, atol=1e-6), (loss, ref)

    # Exercise the multi-tile grid and the last-tile mask path with a ragged
    # size (not a multiple of 128) and deliberately tiny tiles.
    fake2 = jax.random.normal(k3, (3, 5, 7, 11), dtype=jnp.float32)   # 1155 elems
    inputv2 = jax.random.normal(k4, (3, 5, 7, 11), dtype=jnp.float32)
    loss2 = l2_loss_pallas(fake2, inputv2, small_input_bytes=0,
                           max_tile_bytes=4 * LANES * 4)  # 8-row tiles -> 2 tiles
    jax.block_until_ready(loss2)
    ref2 = jnp.mean((jnp.abs(fake2 - inputv2) + EPS) ** 2)
    assert jnp.allclose(loss2, ref2, rtol=1e-5, atol=1e-6), (loss2, ref2)

    # Default-path (small-input fallback) sanity check.
    loss3 = l2_loss_pallas(fake, inputv)
    jax.block_until_ready(loss3)
    assert jnp.allclose(loss3, ref, rtol=1e-5, atol=1e-6), (loss3, ref)

    print("KERNEL_OK")
</pallas_src>

<mosaic_0001>
module attributes {stable_mosaic.version = 11 : i64} {
  func.func @kernel(%arg0: i32, %arg1: memref<16x128xf32, #tpu.memory_space<vmem>>, %arg2: memref<16x128xf32, #tpu.memory_space<vmem>>, %arg3: memref<1x1xf32, #tpu.memory_space<vmem>>, %arg4: memref<8x128xf32, #tpu.memory_space<vmem>>) attributes {dimension_semantics = [#tpu.dimension_semantics<arbitrary>], iteration_bounds = array<i64: 1>, scalar_prefetch = 0 : i64, scratch_operands = 1 : i64, tpu.core_type = #tpu.core_type<tc>, window_params = [{transform_indices = @transform_0, window_bounds = array<i64: 16, 128>}, {transform_indices = @transform_1, window_bounds = array<i64: 16, 128>}, {pipeline_mode = #tpu.pipeline_mode<synchronous>, transform_indices = @transform_2, window_bounds = array<i64: 1, 1>}]} {
    %c0_i32 = arith.constant 0 : i32
    %0 = arith.cmpi eq, %arg0, %c0_i32 : i32
    %1 = arith.extui %0 : i1 to i32
    %c0_i32_0 = arith.constant 0 : i32
    %2 = arith.cmpi ne, %1, %c0_i32_0 : i32
    scf.if %2 {
      %cst_11 = arith.constant 0.000000e+00 : f32
      %18 = vector.broadcast %cst_11 : f32 to vector<8x128xf32>
      %c0_12 = arith.constant 0 : index
      %c0_13 = arith.constant 0 : index
      %19 = vector.load %arg4[%c0_12, %c0_13] : memref<8x128xf32, #tpu.memory_space<vmem>>, vector<8x128xf32>
      tpu.vector_store %arg4[%c0_12, %c0_13], %18 {strides = array<i32>} : memref<8x128xf32, #tpu.memory_space<vmem>>, vector<8x128xf32>,
    } else {
    }
    %c0 = arith.constant 0 : index
    %c0_1 = arith.constant 0 : index
    %3 = vector.load %arg1[%c0, %c0_1] : memref<16x128xf32, #tpu.memory_space<vmem>>, vector<16x128xf32>
    %c0_2 = arith.constant 0 : index
    %c0_3 = arith.constant 0 : index
    %4 = vector.load %arg2[%c0_2, %c0_3] : memref<16x128xf32, #tpu.memory_space<vmem>>, vector<16x128xf32>
    %5 = arith.subf %3, %4 : vector<16x128xf32>
    %6 = math.absf %5 : vector<16x128xf32>
    %cst = arith.constant 9.99999997E-7 : f32
    %7 = vector.broadcast %cst : f32 to vector<16x128xf32>
    %8 = arith.addf %6, %7 : vector<16x128xf32>
    %9 = arith.mulf %8, %8 : vector<16x128xf32>
    %c0_4 = arith.constant 0 : index
    %c0_5 = arith.constant 0 : index
    %10 = vector.load %arg4[%c0_4, %c0_5] : memref<8x128xf32, #tpu.memory_space<vmem>>, vector<8x128xf32>
    %11 = vector.shape_cast %9 : vector<16x128xf32> to vector<2x8x128xf32>
    %cst_6 = arith.constant dense<0.000000e+00> : vector<8x128xf32>
    %12 = vector.multi_reduction <add>, %11, %cst_6 [0] : vector<2x8x128xf32> to vector<8x128xf32>
    %13 = arith.addf %10, %12 : vector<8x128xf32>
    %c0_7 = arith.constant 0 : index
    %c0_8 = arith.constant 0 : index
    %14 = vector.load %arg4[%c0_7, %c0_8] : memref<8x128xf32, #tpu.memory_space<vmem>>, vector<8x128xf32>
    tpu.vector_store %arg4[%c0_7, %c0_8], %13 {strides = array<i32>} : memref<8x128xf32, #tpu.memory_space<vmem>>, vector<8x128xf32>,
    %c0_i32_9 = arith.constant 0 : i32
    %15 = arith.cmpi eq, %arg0, %c0_i32_9 : i32
    %16 = arith.extui %15 : i1 to i32
    %c0_i32_10 = arith.constant 0 : i32
    %17 = arith.cmpi ne, %16, %c0_i32_10 : i32
    scf.if %17 {
      %c0_11 = arith.constant 0 : index
      %c0_12 = arith.constant 0 : index
      %18 = vector.load %arg4[%c0_11, %c0_12] : memref<8x128xf32, #tpu.memory_space<vmem>>, vector<8x128xf32>
      %19 = vector.shape_cast %18 : vector<8x128xf32> to vector<1x8x128xf32>
      %cst_13 = arith.constant dense<0.000000e+00> : vector<1xf32>
      %20 = vector.multi_reduction <add>, %19, %cst_13 [1, 2] : vector<1x8x128xf32> to vector<1xf32>
      %21 = vector.shape_cast %20 : vector<1xf32> to vector<1x1x1xf32>
      %22 = vector.extract %21[0, 0, 0] : f32 from vector<1x1x1xf32>
      %23 = vector.broadcast %22 : f32 to vector<1x1xf32>
      %cst_14 = arith.constant 4.8828125E-4 : f32
      %24 = vector.broadcast %cst_14 : f32 to vector<1x1xf32>
      %25 = arith.mulf %23, %24 : vector<1x1xf32>
      %c0_15 = arith.constant 0 : index
      %c0_16 = arith.constant 0 : index
      %26 = vector.load %arg3[%c0_15, %c0_16] : memref<1x1xf32, #tpu.memory_space<vmem>>, vector<1x1xf32>
      tpu.vector_store %arg3[%c0_15, %c0_16], %25 {strides = array<i32>} : memref<1x1xf32, #tpu.memory_space<vmem>>, vector<1x1xf32>,
    } else {
    }
    return
  }
  func.func @transform_0(%arg0: i32) -> (i32, i32) {
    %c0_i32 = arith.constant 0 : i32
    %c0_i32_0 = arith.constant 0 : i32
    return %arg0, %c0_i32 : i32, i32
  }
  func.func @transform_1(%arg0: i32) -> (i32, i32) {
    %c0_i32 = arith.constant 0 : i32
    %c0_i32_0 = arith.constant 0 : i32
    return %arg0, %c0_i32 : i32, i32
  }
  func.func @transform_2(%arg0: i32) -> (i32, i32) {
    %c0_i32 = arith.constant 0 : i32
    %c0_i32_0 = arith.constant 0 : i32
    %c0_i32_1 = arith.constant 0 : i32
    return %c0_i32, %c0_i32_0 : i32, i32
  }
}

</mosaic_0001>

<bundles_post_ra>
// kernel: tpu_custom_call.1
= control target key start
LH: loop header
LB: loop body
LE: loop exit
PB: predicated region body
PF: predicated region fallthrough
CT: control target
= control target key end

     0   :  { %7 = vsyncpa [#allocation4], 0  ;;  %s229_s0 = inlined_call_operand.hbm [shape: f32[16,128], index: 0, kind: input, shape index: {}]   ;;  %s230_s1 = inlined_call_operand.hbm [shape: f32[16,128], index: 1, kind: input, shape index: {}]   ;;  %s231_s2 = inlined_call_operand.hbm [shape: f32[1,1], index: 2, kind: output, shape index: {}]  }
   0x1   :  { %8 = vsyncpa [#allocation7], 0 }
   0x2   :  { %9 = vsyncpa [#allocation5], 0  ;;  %s173_s9 = smov [#allocation3]   ;;  %s101_s13 = scalar_lea.hbm %s229_s0, 256 }
   0x3   :  { %s15_s10 = sshll.u32 %s173_s9, 4  ;;  %p102_p0 = scmp.ne.s32.totalorder %s229_s0, %s101_s13  ;;  %s16_s10 = int_to_ptr.vmem [resolvable:$true] %s15_s10 }
   0x4   :  { %p105_p1 = scmp.lt.u32.totalorder %s101_s13, %s229_s0 }
   0x6   :  { %p107_p2 = pnand %p105_p1, %p102_p0 }
   0x8   :  { %110 = shalt.err (!%p107_p2)
}
   0x9   :  { %s111_s18 = scalar_lea.vmem %s16_s10, 256  ;;  %p116_p4 = scmp.lt.s32.totalorder %s16_s10, %s16_s10 }
   0xa   :  { %p112_p3 = scmp.ne.s32.totalorder %s16_s10, %s111_s18  ;;  %p117_p5 = scmp.lt.s32.totalorder %s111_s18, %s111_s18 }
   0xc   :  { %p118_p6 = por %p117_p5, %p116_p4 }
   0xe   :  { %p119_p7 = pnand %p118_p6, %p112_p3 }
  0x10   :  { %122 = shalt.err (!%p119_p7)
}
  0x11   :  { %s174_s19 = smov 128   ;;  %s175_s20 = smov 8  }
  0x12   :  { %21 = dma.hbm_to_vmem [thread:$0]  %s229_s0, 256, %s16_s10, [#allocation4], %s174_s19, %s174_s19, %s175_s20  }
  0x13   :  { %s176_s23 = smov [#allocation6]   ;;  %s123_s27 = scalar_lea.hbm %s230_s1, 256 }
  0x14   :  { %s27_s24 = sshll.u32 %s176_s23, 4  ;;  %p124_p8 = scmp.ne.s32.totalorder %s230_s1, %s123_s27  ;;  %s28_s24 = int_to_ptr.vmem [resolvable:$true] %s27_s24 }
  0x15   :  { %p127_p9 = scmp.lt.u32.totalorder %s123_s27, %s230_s1 }
  0x17   :  { %p129_p10 = pnand %p127_p9, %p124_p8 }
  0x19   :  { %132 = shalt.err (!%p129_p10)
}
  0x1a   :  { %s133_s4 = scalar_lea.vmem %s28_s24, 256  ;;  %p138_p12 = scmp.lt.s32.totalorder %s28_s24, %s28_s24 }
  0x1b   :  { %p134_p11 = scmp.ne.s32.totalorder %s28_s24, %s133_s4  ;;  %p139_p13 = scmp.lt.s32.totalorder %s133_s4, %s133_s4 }
  0x1d   :  { %p140_p0 = por %p139_p13, %p138_p12 }
  0x1f   :  { %p141_p1 = pnand %p140_p0, %p134_p11 }
  0x21   :  { %144 = shalt.err (!%p141_p1)
}
  0x22   :  { %33 = dma.hbm_to_vmem [thread:$0]  %s230_s1, 256, %s28_s24, [#allocation7], %s174_s19, %s174_s19, %s175_s20  }
  0x23   :  { %167 = dma.done.wait [#allocation4], 256  }
  0x24   :  { %168 = vsyncadd [#allocation4], 4294967040 }
  0x25   :  { %169 = dma.done.wait [#allocation7], 256  }
  0x26   :  { %170 = vsyncadd [#allocation7], 4294967040  ;;  %v45_v0 = vld [vmem:[#allocation3] sm:$0xff]  ;;  %v46_v1 = vld [vmem:[#allocation3 + $0x8] sm:$0xff]  ;;  %s177_s1 = smov [#allocation8]   ;;  %vm76_vm0 = vcmask 0  }
  0x27   :  { %v47_v2 = vld [vmem:[#allocation6] sm:$0xff]  ;;  %v48_v3 = vld [vmem:[#allocation6 + $0x8] sm:$0xff]  ;;  %s84_s6 = sshll.u32 %s177_s1, 4  ;;  %s85_s6 = int_to_ptr.vmem [resolvable:$true] %s84_s6 }
  0x28   :  { %v49_v4 = vsub.f32 %v45_v0, %v47_v2  ;;  %v50_v5 = vsub.f32 %v46_v1, %v48_v3  ;;  %s145_s8 = scalar_lea.vmem %s85_s6, 16  ;;  %s149_s9 = scalar_lea.vmem %s85_s6, 32 }
  0x29   :  { %p146_p2 = scmp.ne.s32.totalorder %s85_s6, %s145_s8  ;;  %p150_p3 = scmp.lt.s32.totalorder %s85_s6, %s85_s6 }
  0x2a   :  { %v51_v6 = vand.u32 2147483647, %v49_v4  ;;  %v52_v7 = vand.u32 2147483647, %v50_v5  ;;  %p151_p4 = scmp.lt.s32.totalorder %s149_s9, %s145_s8 }
  0x2c   :  { %v53_v8 = vadd.f32 1e-06, %v51_v6  ;;  %v54_v9 = vadd.f32 1e-06, %v52_v7  ;;  %p152_p5 = por %p151_p4, %p150_p3 }
  0x2e   :  { %v55_v10 = vmul.f32 %v53_v8, %v53_v8  ;;  %v56_v11 = vmul.f32 %v54_v9, %v54_v9  ;;  %p153_p6 = pnand %p152_p5, %p146_p2 }
  0x30   :  { %v58_v12 = vadd.f32 %v56_v11, %v55_v10 }
  0x32   :  { %65 = vadd.xlane.f32.xlu0 %v58_v12 }
  0xbf   :  { %v66_v13 = vpop.xlane.xlu0 %65 }
  0xc0   :  { %v67_v14 = vrot.slane %v66_v13, 4 }
  0xc2   :  { %v68_v15 = vadd.f32 %v67_v14, %v66_v13 }
  0xc4   :  { %v69_v16 = vrot.slane %v68_v15, 2 }
  0xc6   :  { %v70_v17 = vadd.f32 %v69_v16, %v68_v15 }
  0xc8   :  { %v71_v18 = vrot.slane %v70_v17, 1 }
  0xca   :  { %v72_v19 = vadd.f32 %v71_v18, %v70_v17 }
  0xcc   :  { %94 = vpush %v72_v19 }
  0xfd   :  { %s95_s7 = spop %94 }
  0xfe   :  { %v74_v20 = vstv %s95_s7 }
  0xff   :  { %v75_v21 = vmul.f32 0.00048828125, %v74_v20 }
 0x101   :  { %77 = vst.msk [vmem:[#allocation8] sm:$0x1] %vm76_vm0, %v75_v21 }
 0x102   :  { %156 = shalt.err (!%p153_p6)
}
 0x103   :  { %s157_s12 = scalar_lea.hbm %s231_s2, 16 }
 0x104   :  { %p158_p7 = scmp.ne.s32.totalorder %s231_s2, %s157_s12  ;;  %p161_p8 = scmp.lt.u32.totalorder %s157_s12, %s231_s2 }
 0x106   :  { %p163_p9 = pnand %p161_p8, %p158_p7 }
 0x108   :  { %166 = shalt.err (!%p163_p9)
}
 0x109   :  { %87 = dma.vmem_to_hbm [thread:$0]  %s85_s6, 16, %s231_s2, [#allocation5]  }
 0x10a   :  { %171 = dma.done.wait [#allocation5], 16  }
 0x10b   :  { %172 = vsyncadd [#allocation5], 4294967280 }
 0x10c   :  { %91 = vsyncpa [#allocation4], 1 }
 0x10d   :  { %92 = vsyncpa [#allocation7], 1 }
 0x10e   :  { %93 = vsyncpa [#allocation5], 1 }

</bundles_post_ra>
